<compile_context>
chip_gen: v7x
topology: tpu7x:2x2x1
jax: 0.10.0
libtpu: 0.0.40
codegen_flags: <defaults>
</compile_context>

<pallas_src>
import functools

import jax
import jax.numpy as jnp
from jax import lax
from jax.experimental import pallas as pl
from jax.experimental.pallas import tpu as pltpu

BN_EPS = 1e-5


# --------------------------------------------------------------------------- #
# Kernel
# --------------------------------------------------------------------------- #
def _model_kernel(x_ref, wrep_ref, eb_ref, bbb_ref, w1_ref, b1_ref, wc_ref,
                  bc_ref, out_ref, acc_ref, *,
                  chunk, n_full, tail, rem_hw, row_block, total_rows, mask_rows):
    """Grid = (batch blocks [parallel], spatial blocks [arbitrary reduction]).

    x block is (row_block, tile_hw) f32 with row r = b*C + c (flattened batch x
    channel rows).  acc is a lane-wise (row_block, chunk) f32 partial-sum.
    """
    k = pl.program_id(1)

    @pl.when(k == 0)
    def _init():
        acc_ref[...] = jnp.zeros_like(acc_ref)

    x = x_ref[...]                                     # (row_block, tile_hw) f32

    # Mask out-of-range columns (HW % tile_hw) / rows (B % tile_b); both
    # branches are compile-time no-ops when the shapes divide evenly.
    mask = None
    if rem_hw:
        col = lax.broadcasted_iota(jnp.int32, x.shape, 1)
        mask = (col < rem_hw) | (k != pl.num_programs(1) - 1)
    if mask_rows:
        row = lax.broadcasted_iota(jnp.int32, x.shape, 0)
        rmask = row < (total_rows - pl.program_id(0) * row_block)
        mask = rmask if mask is None else (mask & rmask)
    if mask is not None:
        x = jnp.where(mask, x, 0.0)

    # Lane-wise partial accumulation: VPU-only in the hot loop; the single
    # cross-lane reduce is deferred to the finalize step.
    psum = x[:, 0:chunk]
    for j in range(1, n_full):
        psum = psum + x[:, j * chunk:(j + 1) * chunk]
    if tail:
        psum = psum.at[:, 0:tail].add(x[:, n_full * chunk:])
    acc_ref[...] += psum

    @pl.when(k == pl.num_programs(1) - 1)
    def _finalize():
        # Spatial sum per (b, c) row; 1/(H*W) is pre-folded into wrep.
        p = jnp.sum(acc_ref[...], axis=-1, keepdims=True)     # (row_block, 1)
        # Backbone projection: scale each row by its channel's weight row, then
        # regroup rows -> batches with a one-hot matmul (no in-kernel reshape).
        q = p * wrep_ref[...]                                  # (row_block, FEAT)
        feats = jnp.dot(eb_ref[...], q,
                        preferred_element_type=jnp.float32) + bbb_ref[...]
        h = jnp.dot(feats, w1_ref[...],
                    preferred_element_type=jnp.float32) + b1_ref[...]
        h = jnp.maximum(h, 0.0)     # ReLU; Dropout(p=0.2) is identity in eval
        # eval-mode BatchNorm1d is pre-folded into wc/bc.
        out_ref[...] = jnp.dot(h, wc_ref[...],
                               preferred_element_type=jnp.float32) + bc_ref[...]


# --------------------------------------------------------------------------- #
# Tiling / hardware helpers
# --------------------------------------------------------------------------- #
def _vmem_capacity_bytes():
    """Per-core VMEM capacity; conservative 64 MiB (v7x) fallback."""
    try:
        cap = int(pltpu.get_tpu_info().vmem_capacity_bytes)
    except Exception:
        cap = 64 << 20
    return max(cap, 32 << 20)


def _choose_tiles(B, C, HW, x_tile_budget):
    """Pick (tile_b, tile_hw).

    * tile_b: full batch when B < 16 (block dims must be 8-aligned or full
      extent); otherwise <= 256, a multiple of 8, and chosen so the 'parallel'
      batch axis has >= 2 blocks (keeps both v7x TensorCores busy).
    * tile_hw: largest multiple of 128 such that one *padded* f32 x tile fits
      x_tile_budget (the pipeline double-buffers it; the caller leaves 2x
      headroom under the VMEM limit).  HW need not divide tile_hw.
    """
    if B < 16:
        # TODO(synk): for tiny batches the HW reduction is not split across
        # v7x's two TensorCores (would need per-core partial accumulators).
        tile_b = B
    else:
        tile_b = min(B, 256)
        if -(-B // tile_b) < 2:                       # only one batch block
            tile_b = max(8, (((B + 1) // 2 + 7) // 8) * 8)
    # Keep the one-hot regrouping matrix (tile_b x tile_b*C) small.
    while tile_b > 8 and tile_b * tile_b * C * 4 > (4 << 20):
        tile_b = max(8, ((tile_b // 2 + 7) // 8) * 8)

    row_block = tile_b * C
    padded_rows = ((row_block + 7) // 8) * 8          # f32 sublane padding
    max_hw = x_tile_budget // (padded_rows * 4)
    if HW <= max_hw:
        tile_hw = HW                                  # full spatial extent
    else:
        tile_hw = max(128, (max_hw // 128) * 128)     # lane-aligned tile
    return tile_b, tile_hw


def _fold_params(params, hw, tile_b):
    """Fold 1/(H*W) into the backbone projection and eval-mode BatchNorm into
    the classifier; zero-pad the classifier to a lane-dense 128-multiple; build
    the row-replicated backbone weight and the one-hot batch-grouping matrix."""
    s = params["bn_gamma"] * jax.lax.rsqrt(params["bn_var"] + BN_EPS)   # (1, HID)
    t = params["bn_beta"] - params["bn_mean"] * s                        # (1, HID)
    wc_f = params["wc"] * s.reshape(-1, 1)                               # (HID, NC)
    bc_f = params["bc"] + t @ params["wc"]                               # (1, NC)

    nc = params["wc"].shape[1]
    nc_pad = ((nc + 127) // 128) * 128
    wc_p = jnp.zeros((wc_f.shape[0], nc_pad), jnp.float32).at[:, :nc].set(wc_f)
    bc_p = jnp.zeros((1, nc_pad), jnp.float32).at[:, :nc].set(bc_f)

    wbb_s = params["wbb"] / float(hw)                 # fold GAP mean into weights
    C = params["wbb"].shape[0]
    wrep = jnp.tile(wbb_s, (tile_b, 1))               # (tile_b*C, FEAT): row r -> wbb[r % C]
    eb = jnp.repeat(jnp.eye(tile_b, dtype=jnp.float32), C, axis=1)  # (tile_b, tile_b*C)
    return wrep, eb, params["bbb"], params["w1"], params["b1"], wc_p, bc_p, nc


# --------------------------------------------------------------------------- #
# Wrapper
# --------------------------------------------------------------------------- #
def foundational_cv_model_with_classifier(x_nchw, params):
    """x_nchw: (B, C, H, W) float32.  Returns logits (B, NUM_CLASSES) float32."""
    B, C, H, W = x_nchw.shape
    HW = H * W
    x2d = x_nchw.reshape(B * C, HW)                   # f32, contiguity-preserving view

    cap = _vmem_capacity_bytes()
    if cap >= (128 << 20):                            # v5e / v6e: 128 MiB VMEM
        vmem_limit = 96 << 20
        x_tile_budget = 20 << 20
    else:                                             # v7x: 64 MiB per TensorCore
        vmem_limit = min(48 << 20, (cap * 3) // 4)
        x_tile_budget = 8 << 20

    tile_b, tile_hw = _choose_tiles(B, C, HW, x_tile_budget)
    row_block = tile_b * C
    padded_rows = ((row_block + 7) // 8) * 8
    grid = (pl.cdiv(B, tile_b), pl.cdiv(HW, tile_hw))

    wrep, eb, bbb, w1, b1, wc_p, bc_p, nc = _fold_params(params, HW, tile_b)
    nc_pad = wc_p.shape[1]

    chunk = min(128, tile_hw)
    n_full = tile_hw // chunk
    kernel = functools.partial(
        _model_kernel,
        chunk=chunk,
        n_full=n_full,
        tail=tile_hw - n_full * chunk,
        rem_hw=HW % tile_hw,
        row_block=row_block,
        total_rows=B * C,
        mask_rows=(B % tile_b) != 0,
    )

    # Deeper x pipeline only when the per-tile DMA is small (v7x-style parts).
    x_spec_kwargs = {}
    x_tile_bytes = padded_rows * tile_hw * 4
    if cap < (128 << 20) and x_tile_bytes < (4 << 20) and grid[1] >= 4:
        x_spec_kwargs["pipeline_mode"] = pl.Buffered(3)
    x_spec = pl.BlockSpec((row_block, tile_hw), lambda i, k: (i, k),
                          **x_spec_kwargs)

    def _resident(a):
        # Weight blocks: full array, constant block index -> stays VMEM-resident.
        return pl.BlockSpec(a.shape, lambda i, k, z=(0,) * a.ndim: z)

    out_padded = pl.pallas_call(
        kernel,
        out_shape=jax.ShapeDtypeStruct((B, nc_pad), jnp.float32),
        grid_spec=pltpu.PrefetchScalarGridSpec(
            num_scalar_prefetch=0,
            grid=grid,
            in_specs=[
                x_spec,
                _resident(wrep), _resident(eb),
                _resident(bbb), _resident(w1), _resident(b1),
                _resident(wc_p), _resident(bc_p),
            ],
            out_specs=pl.BlockSpec((tile_b, nc_pad), lambda i, k: (i, 0)),
            scratch_shapes=[pltpu.VMEM((row_block, chunk), jnp.float32)],
        ),
        compiler_params=pltpu.CompilerParams(
            dimension_semantics=("parallel", "arbitrary"),
            vmem_limit_bytes=int(vmem_limit),
        ),
    )(x2d, wrep, eb, bbb, w1, b1, wc_p, bc_p)

    return out_padded[:, :nc]


# --------------------------------------------------------------------------- #
# Parameters (synthetic, deterministic)
# --------------------------------------------------------------------------- #
def init_params(key, in_channels, feat_dim, hidden, num_classes):
    """Linear weights stored (in, out) == transpose of nn.Linear's (out, in),
    so x @ W + b is numerically identical to PyTorch's x @ W_pt.T + b."""
    ks = jax.random.split(key, 8)
    scale = 0.05
    return {
        # synthetic backbone projection (C -> feat_dim) applied after GAP
        "wbb": scale * jax.random.normal(ks[0], (in_channels, feat_dim), jnp.float32),
        "bbb": scale * jax.random.normal(ks[1], (1, feat_dim), jnp.float32),
        # hidden block: Linear(feat_dim, hidden)
        "w1": scale * jax.random.normal(ks[2], (feat_dim, hidden), jnp.float32),
        "b1": scale * jax.random.normal(ks[3], (1, hidden), jnp.float32),
        # BatchNorm1d(hidden) eval-mode running stats + affine
        "bn_gamma": jnp.ones((1, hidden), jnp.float32),
        "bn_beta": jnp.zeros((1, hidden), jnp.float32),
        "bn_mean": 0.1 * jax.random.normal(ks[4], (1, hidden), jnp.float32),
        "bn_var": jnp.abs(1.0 + 0.1 * jax.random.normal(ks[5], (1, hidden), jnp.float32)),
        # classifier: Linear(hidden, num_classes)
        "wc": scale * jax.random.normal(ks[6], (hidden, num_classes), jnp.float32),
        "bc": scale * jax.random.normal(ks[7], (1, num_classes), jnp.float32),
    }


# --------------------------------------------------------------------------- #
# Demo / self-check
# --------------------------------------------------------------------------- #
if __name__ == "__main__":
    B, C, H, W = 2, 4, 16, 16
    FEAT_DIM = 32     # what calculate_backbone_out() would return for the backbone
    HIDDEN = 32       # `hidden` is an int -> one Linear/ReLU/Dropout/BatchNorm block
    NUM_CLASSES = 10

    key = jax.random.PRNGKey(0)
    k_x, k_p = jax.random.split(key)
    x = jax.random.normal(k_x, (B, C, H, W), jnp.float32)
    params = init_params(k_p, C, FEAT_DIM, HIDDEN, NUM_CLASSES)

    logits = foundational_cv_model_with_classifier(x, params)
    logits = jax.block_until_ready(logits)

    # Pure-JAX f32 reference (same eval-mode semantics, no dtype tricks needed
    # now that the kernel consumes f32 directly).
    gap = jnp.mean(x.reshape(B, C, H * W), axis=-1)
    feats = gap @ params["wbb"] + params["bbb"]
    h = jnp.maximum(feats @ params["w1"] + params["b1"], 0.0)
    h = (h - params["bn_mean"]) * jax.lax.rsqrt(params["bn_var"] + BN_EPS) \
        * params["bn_gamma"] + params["bn_beta"]
    ref = h @ params["wc"] + params["bc"]

    assert logits.shape == (B, NUM_CLASSES)
    assert jnp.allclose(logits, ref, atol=1e-3, rtol=1e-3), \
        f"max abs err = {jnp.max(jnp.abs(logits - ref))}"

    print("KERNEL_OK")
</pallas_src>

<mosaic_0001>
module attributes {stable_mosaic.version = 11 : i64} {
  func.func @_model_kernel(%arg0: i32, %arg1: i32, %arg2: memref<8x256xf32, #tpu.memory_space<vmem>>, %arg3: memref<8x32xf32, #tpu.memory_space<vmem>>, %arg4: memref<2x8xf32, #tpu.memory_space<vmem>>, %arg5: memref<1x32xf32, #tpu.memory_space<vmem>>, %arg6: memref<32x32xf32, #tpu.memory_space<vmem>>, %arg7: memref<1x32xf32, #tpu.memory_space<vmem>>, %arg8: memref<32x128xf32, #tpu.memory_space<vmem>>, %arg9: memref<1x128xf32, #tpu.memory_space<vmem>>, %arg10: memref<2x128xf32, #tpu.memory_space<vmem>>, %arg11: memref<8x128xf32, #tpu.memory_space<vmem>>) attributes {dimension_semantics = [#tpu.dimension_semantics<parallel>, #tpu.dimension_semantics<arbitrary>], iteration_bounds = array<i64: 1, 1>, scalar_prefetch = 0 : i64, scratch_operands = 1 : i64, tpu.core_type = #tpu.core_type<tc>, window_params = [{transform_indices = @transform_0, window_bounds = array<i64: 8, 256>}, {pipeline_mode = #tpu.pipeline_mode<synchronous>, transform_indices = @transform_1, window_bounds = array<i64: 8, 32>}, {pipeline_mode = #tpu.pipeline_mode<synchronous>, transform_indices = @transform_2, window_bounds = array<i64: 2, 8>}, {pipeline_mode = #tpu.pipeline_mode<synchronous>, transform_indices = @transform_3, window_bounds = array<i64: 1, 32>}, {pipeline_mode = #tpu.pipeline_mode<synchronous>, transform_indices = @transform_4, window_bounds = array<i64: 32, 32>}, {pipeline_mode = #tpu.pipeline_mode<synchronous>, transform_indices = @transform_5, window_bounds = array<i64: 1, 32>}, {pipeline_mode = #tpu.pipeline_mode<synchronous>, transform_indices = @transform_6, window_bounds = array<i64: 32, 128>}, {pipeline_mode = #tpu.pipeline_mode<synchronous>, transform_indices = @transform_7, window_bounds = array<i64: 1, 128>}, {transform_indices = @transform_8, window_bounds = array<i64: 2, 128>}]} {
    %c0_i32 = arith.constant 0 : i32
    %0 = arith.cmpi eq, %arg1, %c0_i32 : i32
    %1 = arith.extui %0 : i1 to i32
    %c0_i32_0 = arith.constant 0 : i32
    %2 = arith.cmpi ne, %1, %c0_i32_0 : i32
    scf.if %2 {
      %cst = arith.constant 0.000000e+00 : f32
      %13 = vector.broadcast %cst : f32 to vector<8x128xf32>
      %c0_8 = arith.constant 0 : index
      %c0_9 = arith.constant 0 : index
      %14 = vector.load %arg11[%c0_8, %c0_9] : memref<8x128xf32, #tpu.memory_space<vmem>>, vector<8x128xf32>
      tpu.vector_store %arg11[%c0_8, %c0_9], %13 {strides = array<i32>} : memref<8x128xf32, #tpu.memory_space<vmem>>, vector<8x128xf32>,
    } else {
    }
    %c0 = arith.constant 0 : index
    %c0_1 = arith.constant 0 : index
    %3 = vector.load %arg2[%c0, %c0_1] : memref<8x256xf32, #tpu.memory_space<vmem>>, vector<8x256xf32>
    %4 = vector.extract_strided_slice %3 {offsets = [0, 0], sizes = [8, 128], strides = [1, 1]} : vector<8x256xf32> to vector<8x128xf32>
    %5 = vector.extract_strided_slice %3 {offsets = [0, 128], sizes = [8, 128], strides = [1, 1]} : vector<8x256xf32> to vector<8x128xf32>
    %6 = arith.addf %4, %5 : vector<8x128xf32>
    %c0_2 = arith.constant 0 : index
    %c0_3 = arith.constant 0 : index
    %7 = vector.load %arg11[%c0_2, %c0_3] : memref<8x128xf32, #tpu.memory_space<vmem>>, vector<8x128xf32>
    %8 = arith.addf %7, %6 : vector<8x128xf32>
    %c0_4 = arith.constant 0 : index
    %c0_5 = arith.constant 0 : index
    %9 = vector.load %arg11[%c0_4, %c0_5] : memref<8x128xf32, #tpu.memory_space<vmem>>, vector<8x128xf32>
    tpu.vector_store %arg11[%c0_4, %c0_5], %8 {strides = array<i32>} : memref<8x128xf32, #tpu.memory_space<vmem>>, vector<8x128xf32>,
    %c0_i32_6 = arith.constant 0 : i32
    %10 = arith.cmpi eq, %arg1, %c0_i32_6 : i32
    %11 = arith.extui %10 : i1 to i32
    %c0_i32_7 = arith.constant 0 : i32
    %12 = arith.cmpi ne, %11, %c0_i32_7 : i32
    scf.if %12 {
      %c0_8 = arith.constant 0 : index
      %c0_9 = arith.constant 0 : index
      %13 = vector.load %arg11[%c0_8, %c0_9] : memref<8x128xf32, #tpu.memory_space<vmem>>, vector<8x128xf32>
      %cst = arith.constant dense<0.000000e+00> : vector<8xf32>
      %14 = vector.multi_reduction <add>, %13, %cst [1] : vector<8x128xf32> to vector<8xf32>
      %15 = vector.shape_cast %14 : vector<8xf32> to vector<8x1xf32>
      %c0_10 = arith.constant 0 : index
      %c0_11 = arith.constant 0 : index
      %16 = vector.load %arg3[%c0_10, %c0_11] : memref<8x32xf32, #tpu.memory_space<vmem>>, vector<8x32xf32>
      %17 = vector.broadcast %15 : vector<8x1xf32> to vector<8x32xf32>
      %18 = arith.mulf %17, %16 : vector<8x32xf32>
      %c0_12 = arith.constant 0 : index
      %c0_13 = arith.constant 0 : index
      %19 = vector.load %arg4[%c0_12, %c0_13] : memref<2x8xf32, #tpu.memory_space<vmem>>, vector<2x8xf32>
      %cst_14 = arith.constant dense<0.000000e+00> : vector<2x32xf32>
      %20 = tpu.matmul %19, %18, %cst_14 {dimension_numbers = #tpu.dot_dimension_numbers<[1], [0], [0], [1], [0, 0, 1, 1], [], []>} : vector<2x8xf32>, vector<8x32xf32>, vector<2x32xf32> -> vector<2x32xf32>
      %c0_15 = arith.constant 0 : index
      %c0_16 = arith.constant 0 : index
      %21 = vector.load %arg5[%c0_15, %c0_16] : memref<1x32xf32, #tpu.memory_space<vmem>>, vector<1x32xf32>
      %22 = vector.broadcast %21 : vector<1x32xf32> to vector<2x32xf32>
      %23 = arith.addf %20, %22 : vector<2x32xf32>
      %c0_17 = arith.constant 0 : index
      %c0_18 = arith.constant 0 : index
      %24 = vector.load %arg6[%c0_17, %c0_18] : memref<32x32xf32, #tpu.memory_space<vmem>>, vector<32x32xf32>
      %cst_19 = arith.constant dense<0.000000e+00> : vector<2x32xf32>
      %25 = tpu.matmul %23, %24, %cst_19 {dimension_numbers = #tpu.dot_dimension_numbers<[1], [0], [0], [1], [0, 0, 1, 1], [], []>} : vector<2x32xf32>, vector<32x32xf32>, vector<2x32xf32> -> vector<2x32xf32>
      %c0_20 = arith.constant 0 : index
      %c0_21 = arith.constant 0 : index
      %26 = vector.load %arg7[%c0_20, %c0_21] : memref<1x32xf32, #tpu.memory_space<vmem>>, vector<1x32xf32>
      %27 = vector.broadcast %26 : vector<1x32xf32> to vector<2x32xf32>
      %28 = arith.addf %25, %27 : vector<2x32xf32>
      %cst_22 = arith.constant 0.000000e+00 : f32
      %29 = vector.broadcast %cst_22 : f32 to vector<2x32xf32>
      %30 = arith.maximumf %28, %29 : vector<2x32xf32>
      %c0_23 = arith.constant 0 : index
      %c0_24 = arith.constant 0 : index
      %31 = vector.load %arg8[%c0_23, %c0_24] : memref<32x128xf32, #tpu.memory_space<vmem>>, vector<32x128xf32>
      %cst_25 = arith.constant dense<0.000000e+00> : vector<2x128xf32>
      %32 = tpu.matmul %30, %31, %cst_25 {dimension_numbers = #tpu.dot_dimension_numbers<[1], [0], [0], [1], [0, 0, 1, 1], [], []>} : vector<2x32xf32>, vector<32x128xf32>, vector<2x128xf32> -> vector<2x128xf32>
      %c0_26 = arith.constant 0 : index
      %c0_27 = arith.constant 0 : index
      %33 = vector.load %arg9[%c0_26, %c0_27] : memref<1x128xf32, #tpu.memory_space<vmem>>, vector<1x128xf32>
      %34 = vector.broadcast %33 : vector<1x128xf32> to vector<2x128xf32>
      %35 = arith.addf %32, %34 : vector<2x128xf32>
      %c0_28 = arith.constant 0 : index
      %c0_29 = arith.constant 0 : index
      %36 = vector.load %arg10[%c0_28, %c0_29] : memref<2x128xf32, #tpu.memory_space<vmem>>, vector<2x128xf32>
      tpu.vector_store %arg10[%c0_28, %c0_29], %35 {strides = array<i32>} : memref<2x128xf32, #tpu.memory_space<vmem>>, vector<2x128xf32>,
    } else {
    }
    return
  }
  func.func @transform_0(%arg0: i32, %arg1: i32) -> (i32, i32) {
    %c0_i32 = arith.constant 0 : i32
    return %arg0, %arg1 : i32, i32
  }
  func.func @transform_1(%arg0: i32, %arg1: i32) -> (i32, i32) {
    %c0_i32 = arith.constant 0 : i32
    %c0_i32_0 = arith.constant 0 : i32
    %c0_i32_1 = arith.constant 0 : i32
    return %c0_i32, %c0_i32_0 : i32, i32
  }
  func.func @transform_2(%arg0: i32, %arg1: i32) -> (i32, i32) {
    %c0_i32 = arith.constant 0 : i32
    %c0_i32_0 = arith.constant 0 : i32
    %c0_i32_1 = arith.constant 0 : i32
    return %c0_i32, %c0_i32_0 : i32, i32
  }
  func.func @transform_3(%arg0: i32, %arg1: i32) -> (i32, i32) {
    %c0_i32 = arith.constant 0 : i32
    %c0_i32_0 = arith.constant 0 : i32
    %c0_i32_1 = arith.constant 0 : i32
    return %c0_i32, %c0_i32_0 : i32, i32
  }
  func.func @transform_4(%arg0: i32, %arg1: i32) -> (i32, i32) {
    %c0_i32 = arith.constant 0 : i32
    %c0_i32_0 = arith.constant 0 : i32
    %c0_i32_1 = arith.constant 0 : i32
    return %c0_i32, %c0_i32_0 : i32, i32
  }
  func.func @transform_5(%arg0: i32, %arg1: i32) -> (i32, i32) {
    %c0_i32 = arith.constant 0 : i32
    %c0_i32_0 = arith.constant 0 : i32
    %c0_i32_1 = arith.constant 0 : i32
    return %c0_i32, %c0_i32_0 : i32, i32
  }
  func.func @transform_6(%arg0: i32, %arg1: i32) -> (i32, i32) {
    %c0_i32 = arith.constant 0 : i32
    %c0_i32_0 = arith.constant 0 : i32
    %c0_i32_1 = arith.constant 0 : i32
    return %c0_i32, %c0_i32_0 : i32, i32
  }
  func.func @transform_7(%arg0: i32, %arg1: i32) -> (i32, i32) {
    %c0_i32 = arith.constant 0 : i32
    %c0_i32_0 = arith.constant 0 : i32
    %c0_i32_1 = arith.constant 0 : i32
    return %c0_i32, %c0_i32_0 : i32, i32
  }
  func.func @transform_8(%arg0: i32, %arg1: i32) -> (i32, i32) {
    %c0_i32 = arith.constant 0 : i32
    %c0_i32_0 = arith.constant 0 : i32
    return %arg0, %c0_i32 : i32, i32
  }
}

</mosaic_0001>

<bundles_post_ra>
// kernel: tpu_custom_call.1
= control target key start
LH: loop header
LB: loop body
LE: loop exit
PB: predicated region body
PF: predicated region fallthrough
CT: control target
= control target key end

     0   :  { %13 = vsyncpa [#allocation4], 0  ;;  %s685_s0 = inlined_call_operand.hbm [shape: f32[8,256], index: 0, kind: input, shape index: {}]   ;;  %s686_s1 = inlined_call_operand.hbm [shape: f32[8,32], index: 1, kind: input, shape index: {}]   ;;  %s687_s2 = inlined_call_operand.vmem [shape: f32[2,8], index: 2, kind: input, shape index: {}]   ;;  %s688_s3 = inlined_call_operand.vmem [shape: f32[1,32], index: 3, kind: input, shape index: {}]   ;;  %s689_s4 = inlined_call_operand.hbm [shape: f32[32,32], index: 4, kind: input, shape index: {}]   ;;  %s690_s5 = inlined_call_operand.vmem [shape: f32[1,32], index: 5, kind: input, shape index: {}]   ;;  %s691_s6 = inlined_call_operand.hbm [shape: f32[32,128], index: 6, kind: input, shape index: {}]   ;;  %s692_s7 = inlined_call_operand.vmem [shape: f32[1,128], index: 7, kind: input, shape index: {}]   ;;  %s693_s8 = inlined_call_operand.hbm [shape: f32[2,128], index: 8, kind: output, shape index: {}]  }
   0x1   :  { %14 = vsyncpa [#allocation7], 0 }
   0x2   :  { %15 = vsyncpa [#allocation10], 0 }
   0x3   :  { %16 = vsyncpa [#allocation5], 0  ;;  %s555_s27 = smov [#allocation6]   ;;  %s556_s29 = smov [#allocation3]  }
   0x4   :  { %s33_s28 = sshll.u32 %s555_s27, 4  ;;  %s23_s30 = sshll.u32 %s556_s29, 4  ;;  %s34_s28 = int_to_ptr.vmem [resolvable:$true] %s33_s28  ;;  %s24_s30 = int_to_ptr.vmem [resolvable:$true] %s23_s30 }
   0x5   :  { %s437_s11 = scalar_lea.hbm %s686_s1, 128 }
   0x6   :  { %p438_p0 = scmp.ne.s32.totalorder %s686_s1, %s437_s11  ;;  %p441_p1 = scmp.lt.u32.totalorder %s437_s11, %s686_s1 }
   0x8   :  { %p443_p2 = pnand %p441_p1, %p438_p0 }
   0xa   :  { %446 = shalt.err (!%p443_p2)
}
   0xb   :  { %s447_s16 = scalar_lea.vmem %s34_s28, 128  ;;  %p452_p4 = scmp.lt.s32.totalorder %s34_s28, %s34_s28 }
   0xc   :  { %p448_p3 = scmp.ne.s32.totalorder %s34_s28, %s447_s16  ;;  %p453_p5 = scmp.lt.s32.totalorder %s447_s16, %s447_s16 }
   0xe   :  { %p454_p6 = por %p453_p5, %p452_p4 }
  0x10   :  { %p455_p7 = pnand %p454_p6, %p448_p3 }
  0x12   :  { %458 = shalt.err (!%p455_p7)
}
  0x13   :  { %36 = dma.hbm_to_vmem [thread:$0]  %s686_s1, 128, %s34_s28, [#allocation7]  }
  0x14   :  { %s459_s21 = scalar_lea.hbm %s685_s0, 256 }
  0x15   :  { %p460_p8 = scmp.ne.s32.totalorder %s685_s0, %s459_s21  ;;  %p463_p9 = scmp.lt.u32.totalorder %s459_s21, %s685_s0 }
  0x17   :  { %p465_p10 = pnand %p463_p9, %p460_p8 }
  0x19   :  { %468 = shalt.err (!%p465_p10)
}
  0x1a   :  { %s469_s26 = scalar_lea.vmem %s24_s30, 256  ;;  %p474_p12 = scmp.lt.s32.totalorder %s24_s30, %s24_s30 }
  0x1b   :  { %p470_p11 = scmp.ne.s32.totalorder %s24_s30, %s469_s26  ;;  %p475_p13 = scmp.lt.s32.totalorder %s469_s26, %s469_s26 }
  0x1d   :  { %p476_p0 = por %p475_p13, %p474_p12 }
  0x1f   :  { %p477_p1 = pnand %p476_p0, %p470_p11 }
  0x21   :  { %480 = shalt.err (!%p477_p1)
}
  0x22   :  { %26 = dma.hbm_to_vmem [thread:$0]  %s685_s0, 256, %s24_s30, [#allocation4]  }
  0x23   :  { %s557_s28 = smov [#allocation8]   ;;  %s481_s11 = scalar_lea.hbm %s689_s4, 512 }
  0x24   :  { %s46_s29 = sshll.u32 %s557_s28, 4  ;;  %p482_p2 = scmp.ne.s32.totalorder %s689_s4, %s481_s11  ;;  %s47_s29 = int_to_ptr.vmem [resolvable:$true] %s46_s29 }
  0x25   :  { %p485_p3 = scmp.lt.u32.totalorder %s481_s11, %s689_s4 }
  0x27   :  { %p487_p4 = pnand %p485_p3, %p482_p2 }
  0x29   :  { %490 = shalt.err (!%p487_p4)
}
  0x2a   :  { %s491_s16 = scalar_lea.vmem %s47_s29, 512  ;;  %p496_p6 = scmp.lt.s32.totalorder %s47_s29, %s47_s29 }
  0x2b   :  { %p492_p5 = scmp.ne.s32.totalorder %s47_s29, %s491_s16  ;;  %p497_p7 = scmp.lt.s32.totalorder %s491_s16, %s491_s16 }
  0x2d   :  { %p498_p8 = por %p497_p7, %p496_p6 }
  0x2f   :  { %p499_p9 = pnand %p498_p8, %p492_p5 }
  0x31   :  { %502 = shalt.err (!%p499_p9)
}
  0x32   :  { %s558_s0 = smov 128   ;;  %s559_s30 = smov 8  }
  0x33   :  { %52 = dma.hbm_to_vmem [thread:$0]  %s689_s4, 512, %s47_s29, [#allocation7], %s558_s0, %s558_s0, %s559_s30  }
  0x34   :  { %s560_s19 = smov [#allocation9]   ;;  %s503_s23 = scalar_lea.hbm %s691_s6, 512 }
  0x35   :  { %s60_s20 = sshll.u32 %s560_s19, 4  ;;  %p504_p10 = scmp.ne.s32.totalorder %s691_s6, %s503_s23  ;;  %s61_s20 = int_to_ptr.vmem [resolvable:$true] %s60_s20 }
  0x36   :  { %p507_p11 = scmp.lt.u32.totalorder %s503_s23, %s691_s6 }
  0x38   :  { %p509_p12 = pnand %p507_p11, %p504_p10 }
  0x3a   :  { %512 = shalt.err (!%p509_p12)
}
  0x3b   :  { %s513_s27 = scalar_lea.vmem %s61_s20, 512  ;;  %p518_p0 = scmp.lt.s32.totalorder %s61_s20, %s61_s20 }
  0x3c   :  { %p514_p13 = scmp.ne.s32.totalorder %s61_s20, %s513_s27  ;;  %p519_p1 = scmp.lt.s32.totalorder %s513_s27, %s513_s27 }
  0x3e   :  { %p520_p2 = por %p519_p1, %p518_p0 }
  0x40   :  { %p521_p3 = pnand %p520_p2, %p514_p13 }
  0x42   :  { %524 = shalt.err (!%p521_p3)
}
  0x43   :  { %66 = dma.hbm_to_vmem [thread:$0]  %s691_s6, 512, %s61_s20, [#allocation10], %s558_s0, %s558_s0, %s559_s30  }
  0x44   :  { %547 = dma.done.wait [#allocation4], 256  }
  0x45   :  { %548 = vsyncadd [#allocation4], 4294967040 }
  0x46   :  { %549 = dma.done.wait [#allocation7], 640  }
  0x47   :  { %550 = vsyncadd [#allocation7], 4294966656 }
  0x48   :  { %551 = dma.done.wait [#allocation10], 512  }
  0x49   :  { %552 = vsyncadd [#allocation10], 4294966784  ;;  %v86_v0 = vld [vmem:[#allocation3] sm:$0xff]  ;;  %v87_v1 = vld [vmem:[#allocation3 + $0x8] sm:$0xff]  ;;  %v561_v3 = vmov 0.0   ;;  %vm562_vm0 = vmmov 0  }
  0x4a   :  { %v88_v2 = vadd.f32 %v87_v1, %v86_v0  ;;  %388 = vmatprep.subr.mxu0 %v561_v3  ;;  %390 = vmatprep.mubr.msk.f32.mxu0 %vm562_vm0, %v561_v3  ;;  %v182_v4 = vld [vmem:[#allocation8] sm:$0xff]  ;;  %v183_v5 = vld [vmem:[#allocation8 + $0x8] sm:$0xff]  ;;  %v563_v6 = vmov 0.0|0.0   ;;  %v98_v8 = vld [vmem:[#allocation6] sm:$0xff]  ;;  %vm108_vm1 = vcmask 64512   ;;  %vm193_vm2 = vcmask 261120  }
  0x4b   :  { %401 = vmatprep.mubr.msk.f32.mxu1 %vm562_vm0, %v561_v3  ;;  %415 = vmatprep.subr.bf16.mxu1 %v563_v6  ;;  %v416_v7 = vpack.c.bf16 %v183_v5, %v182_v4  ;;  %v100_v11 = vld [vmem:[%s687_s2] sm:$0x3]  ;;  %v184_v12 = vld [vmem:[#allocation8 + $0x10] sm:$0xff]  ;;  %v185_v13 = vld [vmem:[#allocation8 + $0x18] sm:$0xff]  ;;  %s564_s13 = smov [#allocation11]  }
  0x4c   :  { %96 = vadd.xlane.f32.xlu0 %v88_v2  ;;  %v419_v14 = vpack.c.bf16 %v185_v13, %v184_v12  ;;  %v268_v15 = vld [vmem:[#allocation9] sm:$0xff]  ;;  %v269_v16 = vld [vmem:[#allocation9 + $0x8] sm:$0xff]  ;;  %v270_v22 = vld [vmem:[#allocation9 + $0x10] sm:$0xff]  ;;  %s359_s14 = sshll.u32 %s564_s13, 4  ;;  %s360_s14 = int_to_ptr.vmem [resolvable:$true] %s359_s14 }
  0x4d   :  { %417 = vmatpush3.bf16.msra.mxu1 %v416_v7  ;;  %v422_v17 = vpack.c.bf16 %v269_v16, %v268_v15  ;;  %v370_v18 = vld [vmem:[%s688_s3] ss:$0 sm:$0xff]  ;;  %v271_v23 = vld [vmem:[#allocation9 + $0x18] sm:$0xff]  ;;  %s525_s15 = scalar_lea.vmem %s360_s14, 32  ;;  %p530_p5 = scmp.lt.s32.totalorder %s360_s14, %s360_s14 }
  0x4e   :  { %418 = vmatprep.subr.bf16.mxu1 %v563_v6  ;;  %v425_v24 = vpack.c.bf16 %v271_v23, %v270_v22  ;;  %v372_v25 = vld [vmem:[%s690_s5] ss:$0 sm:$0xff]  ;;  %p526_p4 = scmp.ne.s32.totalorder %s360_s14, %s525_s15  ;;  %p531_p6 = scmp.lt.s32.totalorder %s525_s15, %s525_s15 }
  0x4f   :  { %v374_v30 = vld [vmem:[%s692_s7] ss:$0 sm:$0xff] }
  0x50   :  { %p532_p7 = por %p531_p6, %p530_p5 }
  0x51   :  { %420 = vmatpush3.bf16.msra.mxu1 %v419_v14 }
  0x52   :  { %p533_p8 = pnand %p532_p7, %p526_p4 }
  0xd9   :  { %v97_v9 = vpop.xlane.xlu0 %96 }
  0xda   :  { %v99_v10 = vmul.f32 %v98_v8, %v97_v9 }
  0xdc   :  { %389 = vmatpush3.msra.mxu0 %v99_v10 }
  0xdd   :  { %391 = vmatmul.mubr.msk.f32.vlgmr.msra.gmra.mrb[0].mxu0 %vm108_vm1, %v100_v11  ;;  %421 = vmatprep.subr.bf16.mxu0 %v563_v6 }
  0xde   :  { %412 = vmatprep.mubr.msk.f32.mxu0 %vm562_vm0, %v561_v3  ;;  %423 = vmatpush3.bf16.msra.mxu0 %v422_v17 }
  0xdf   :  { %424 = vmatprep.subr.bf16.mxu0 %v563_v6 }
  0xe2   :  { %426 = vmatpush3.bf16.msra.mxu0 %v425_v24 }
 0x1b0   :  { %v178_v19 = vpop.f32.mrb[0].mxu0 }
 0x1b1   :  { %v179_v20 = vadd.f32 %v370_v18, %v178_v19  ;;  %v392_v21 = vpop.f32.mrb[1].mxu0 }
 0x1b3   :  { %402 = vmatmul.mubr.msk.f32.vlgmr.msra.gmra.mrb[0].mxu1 %vm193_vm2, %v179_v20 }
 0x286   :  { %v263_v26 = vpop.f32.mrb[0].mxu1 }
 0x287   :  { %v264_v27 = vadd.f32 %v372_v25, %v263_v26  ;;  %v403_v28 = vpop.f32.mrb[1].mxu1 }
 0x289   :  { %v267_v29 = vmax.f32 %v264_v27, 0.0 }
 0x28b   :  { %413 = vmatmul.mubr.msk.f32.vlgmr.msra.gmra.mrb[2].mxu0 %vm193_vm2, %v267_v29 }
 0x35e   :  { %v348_v31 = vpop.f32.mrb[2].mxu0 }
 0x35f   :  { %v349_v32 = vadd.f32 %v374_v30, %v348_v31  ;;  %v414_v33 = vpop.f32.mrb[3].mxu0 }
 0x361   :  { %352 = vst [vmem:[#allocation11] sm:$0x3] %v349_v32 }
 0x362   :  { %536 = shalt.err (!%p533_p8)
}
 0x363   :  { %s537_s0 = scalar_lea.hbm %s693_s8, 32 }
 0x364   :  { %p538_p9 = scmp.ne.s32.totalorder %s693_s8, %s537_s0  ;;  %p541_p10 = scmp.lt.u32.totalorder %s537_s0, %s693_s8 }
 0x366   :  { %p543_p11 = pnand %p541_p10, %p538_p9 }
 0x368   :  { %546 = shalt.err (!%p543_p11)
}
 0x369   :  { %362 = dma.vmem_to_hbm [thread:$0]  %s360_s14, 32, %s693_s8, [#allocation5]  }
 0x36a   :  { %553 = dma.done.wait [#allocation5], 32  }
 0x36b   :  { %554 = vsyncadd [#allocation5], 4294967264 }
 0x36c   :  { %366 = vsyncpa [#allocation4], 1 }
 0x36d   :  { %367 = vsyncpa [#allocation7], 1 }
 0x36e   :  { %368 = vsyncpa [#allocation10], 1 }
 0x36f   :  { %369 = vsyncpa [#allocation5], 1 }

</bundles_post_ra>
